<compile_context>
chip_gen: v7x
topology: tpu7x:2x2x1
jax: 0.10.0
libtpu: 0.0.40
codegen_flags: <defaults>
</compile_context>

<pallas_src>
import functools

import jax
import jax.numpy as jnp
from jax.experimental import pallas as pl
from jax.experimental.pallas import tpu as pltpu


def _round_up(x, m):
    return (x + m - 1) // m * m


def _conv2d_relu_kernel(x_ref, w_ref, b_ref, o_ref, col_ref, *,
                        kh_size, kw_size, cin_pad, wp, m_pad):
    """One grid step = one image.

    x_ref:   (1, Cin_pad, L)            -- channel-padded, spatially pre-padded,
                                           spatial flattened into lanes, zero tail
    w_ref:   (Cout_pad, KH*KW*Cin_pad)  -- K ordered (kh, kw, cin)
    b_ref:   (Cout_pad, 1)
    o_ref:   (1, Cout_pad, M_pad)       -- M_pad multiple of 128 (lane-dense)
    col_ref: (KH*KW*Cin_pad, M_pad)     -- VMEM im2col scratch
    """
    # Build im2col once: each tap is a contiguous lane slice of the flattened
    # input (no per-tap reshape/relayout), written at an 8-aligned sublane row.
    for kh in range(kh_size):
        for kw in range(kw_size):
            tap = kh * kw_size + kw
            base = kh * wp + kw
            col_ref[tap * cin_pad:(tap + 1) * cin_pad, :] = (
                x_ref[0, :, base:base + m_pad])

    # Single wide-K MXU contraction: (Cout_pad, K) x (K, M_pad) -> (Cout_pad, M_pad)
    acc = jnp.dot(w_ref[...], col_ref[...], preferred_element_type=jnp.float32)
    acc = acc + b_ref[...]                       # bias broadcast over lanes
    acc = jnp.maximum(acc, 0.0)                  # ReLU
    o_ref[0] = acc.astype(o_ref.dtype)


def basic_conv2d_relu(x_nchw, weight_oihw, bias, padding=0):
    """Equivalent of BasicConv2d.forward: relu(conv2d(x, W, b, stride=1, padding)).

    x_nchw:      (N, Cin, H, W)
    weight_oihw: (Cout, Cin, KH, KW)
    bias:        (Cout,)
    returns:     (N, Cout, Ho, Wo)
    """
    n, cin, h, w = x_nchw.shape
    cout, cin_w, kh, kw = weight_oihw.shape
    assert cin == cin_w

    hp, wp = h + 2 * padding, w + 2 * padding
    ho, wo = hp - kh + 1, wp - kw + 1

    # Hardware-friendly padded sizes.
    cin_pad = _round_up(cin, 8)
    cout_pad = _round_up(cout, 8)
    m_pad = _round_up(ho * wp, 128)                     # lane-dense output width
    k_dim = kh * kw * cin_pad                           # contraction depth
    l_pad = _round_up((kh - 1) * wp + (kw - 1) + m_pad, 128)

    dt = x_nchw.dtype
    itemsize = jnp.dtype(dt).itemsize

    # ---- layout glue (outside the kernel) ----
    # Spatial zero-pad + channel zero-pad, flatten spatial into lanes, zero tail.
    x_p = jnp.pad(x_nchw, ((0, 0), (0, cin_pad - cin),
                           (padding, padding), (padding, padding)))
    x_flat = x_p.reshape(n, cin_pad, hp * wp)
    x_flat = jnp.pad(x_flat, ((0, 0), (0, 0), (0, l_pad - hp * wp)))

    # Weights -> (Cout_pad, KH*KW*Cin_pad), K ordered (kh, kw, cin); zero-padded
    # channels/outputs contribute nothing.
    w_p = jnp.pad(weight_oihw, ((0, cout_pad - cout), (0, cin_pad - cin),
                                (0, 0), (0, 0))).astype(dt)
    w_mat = jnp.transpose(w_p, (0, 2, 3, 1)).reshape(cout_pad, k_dim)

    b_col = jnp.pad(bias, (0, cout_pad - cout)).reshape(cout_pad, 1)

    kernel = functools.partial(_conv2d_relu_kernel, kh_size=kh, kw_size=kw,
                               cin_pad=cin_pad, wp=wp, m_pad=m_pad)

    flops = 2 * n * ho * wo * kh * kw * cin * cout
    bytes_accessed = int((x_flat.size + w_mat.size + b_col.size
                          + n * cout_pad * m_pad) * itemsize)

    out_flat = pl.pallas_call(
        kernel,
        out_shape=jax.ShapeDtypeStruct((n, cout_pad, m_pad), dt),
        grid_spec=pltpu.PrefetchScalarGridSpec(
            num_scalar_prefetch=0,
            grid=(n,),
            in_specs=[
                pl.BlockSpec((1, cin_pad, l_pad), lambda i: (i, 0, 0)),
                pl.BlockSpec((cout_pad, k_dim), lambda i: (0, 0)),
                pl.BlockSpec((cout_pad, 1), lambda i: (0, 0)),
            ],
            out_specs=pl.BlockSpec((1, cout_pad, m_pad), lambda i: (i, 0, 0)),
            scratch_shapes=[pltpu.VMEM((k_dim, m_pad), dt)],
        ),
        compiler_params=pltpu.CompilerParams(
            dimension_semantics=("parallel",)),
        cost_estimate=pl.CostEstimate(flops=flops, transcendentals=0,
                                      bytes_accessed=bytes_accessed),
    )(x_flat, w_mat, b_col)

    # Discard channel padding and the wrap-around / tail columns (j >= Wo).
    out = out_flat[:, :cout, :ho * wp].reshape(n, cout, ho, wp)[:, :, :, :wo]
    return out


if __name__ == "__main__":
    key = jax.random.PRNGKey(0)
    k_x, k_w, k_b = jax.random.split(key, 3)

    # Small shapes consistent with the module: BasicConv2d(4, 8, 3, padding=1)
    N, CIN, H, W = 2, 4, 16, 16
    COUT, KH, KW, PAD = 8, 3, 3, 1

    x = jax.random.normal(k_x, (N, CIN, H, W), dtype=jnp.float32)
    weight = jax.random.normal(k_w, (COUT, CIN, KH, KW), dtype=jnp.float32) * 0.1
    bias = jax.random.normal(k_b, (COUT,), dtype=jnp.float32) * 0.1

    out = basic_conv2d_relu(x, weight, bias, padding=PAD)
    out = jax.block_until_ready(out)

    # Reference check against XLA's conv (NCHW / OIHW) + bias + relu.
    ref = jax.lax.conv_general_dilated(
        x, weight, window_strides=(1, 1),
        padding=((PAD, PAD), (PAD, PAD)),
        dimension_numbers=("NCHW", "OIHW", "NCHW"))
    ref = jnp.maximum(ref + bias[None, :, None, None], 0.0)

    assert out.shape == (N, COUT, H, W), out.shape
    assert jnp.allclose(out, ref, atol=1e-4, rtol=1e-4), float(
        jnp.max(jnp.abs(out - ref)))

    print("KERNEL_OK")
</pallas_src>

<mosaic_0001>
module attributes {stable_mosaic.version = 11 : i64} {
  func.func @_conv2d_relu_kernel(%arg0: i32, %arg1: memref<1x8x512xf32, #tpu.memory_space<vmem>>, %arg2: memref<8x72xf32, #tpu.memory_space<vmem>>, %arg3: memref<8x1xf32, #tpu.memory_space<vmem>>, %arg4: memref<1x8x384xf32, #tpu.memory_space<vmem>>, %arg5: memref<72x384xf32, #tpu.memory_space<vmem>>) attributes {dimension_semantics = [#tpu.dimension_semantics<parallel>], iteration_bounds = array<i64: 2>, scalar_prefetch = 0 : i64, scratch_operands = 1 : i64, tpu.core_type = #tpu.core_type<tc>, window_params = [{transform_indices = @transform_0, window_bounds = array<i64: 1, 8, 512>}, {pipeline_mode = #tpu.pipeline_mode<synchronous>, transform_indices = @transform_1, window_bounds = array<i64: 8, 72>}, {pipeline_mode = #tpu.pipeline_mode<synchronous>, transform_indices = @transform_2, window_bounds = array<i64: 8, 1>}, {transform_indices = @transform_3, window_bounds = array<i64: 1, 8, 384>}]} {
    %c0 = arith.constant 0 : index
    %c0_0 = arith.constant 0 : index
    %c0_1 = arith.constant 0 : index
    %0 = vector.load %arg1[%c0, %c0_0, %c0_1] : memref<1x8x512xf32, #tpu.memory_space<vmem>>, vector<1x8x384xf32>
    %1 = vector.shape_cast %0 : vector<1x8x384xf32> to vector<8x384xf32>
    %c0_2 = arith.constant 0 : index
    %c0_3 = arith.constant 0 : index
    %2 = vector.load %arg5[%c0_2, %c0_3] : memref<72x384xf32, #tpu.memory_space<vmem>>, vector<8x384xf32>
    tpu.vector_store %arg5[%c0_2, %c0_3], %1 {strides = array<i32>} : memref<72x384xf32, #tpu.memory_space<vmem>>, vector<8x384xf32>,
    %c0_4 = arith.constant 0 : index
    %c0_5 = arith.constant 0 : index
    %c1 = arith.constant 1 : index
    %3 = vector.load %arg1[%c0_4, %c0_5, %c1] : memref<1x8x512xf32, #tpu.memory_space<vmem>>, vector<1x8x384xf32>
    %4 = vector.shape_cast %3 : vector<1x8x384xf32> to vector<8x384xf32>
    %c8 = arith.constant 8 : index
    %c0_6 = arith.constant 0 : index
    %5 = vector.load %arg5[%c8, %c0_6] : memref<72x384xf32, #tpu.memory_space<vmem>>, vector<8x384xf32>
    tpu.vector_store %arg5[%c8, %c0_6], %4 {strides = array<i32>} : memref<72x384xf32, #tpu.memory_space<vmem>>, vector<8x384xf32>,
    %c0_7 = arith.constant 0 : index
    %c0_8 = arith.constant 0 : index
    %c2 = arith.constant 2 : index
    %6 = vector.load %arg1[%c0_7, %c0_8, %c2] : memref<1x8x512xf32, #tpu.memory_space<vmem>>, vector<1x8x384xf32>
    %7 = vector.shape_cast %6 : vector<1x8x384xf32> to vector<8x384xf32>
    %c16 = arith.constant 16 : index
    %c0_9 = arith.constant 0 : index
    %8 = vector.load %arg5[%c16, %c0_9] : memref<72x384xf32, #tpu.memory_space<vmem>>, vector<8x384xf32>
    tpu.vector_store %arg5[%c16, %c0_9], %7 {strides = array<i32>} : memref<72x384xf32, #tpu.memory_space<vmem>>, vector<8x384xf32>,
    %c0_10 = arith.constant 0 : index
    %c0_11 = arith.constant 0 : index
    %c18 = arith.constant 18 : index
    %9 = vector.load %arg1[%c0_10, %c0_11, %c18] : memref<1x8x512xf32, #tpu.memory_space<vmem>>, vector<1x8x384xf32>
    %10 = vector.shape_cast %9 : vector<1x8x384xf32> to vector<8x384xf32>
    %c24 = arith.constant 24 : index
    %c0_12 = arith.constant 0 : index
    %11 = vector.load %arg5[%c24, %c0_12] : memref<72x384xf32, #tpu.memory_space<vmem>>, vector<8x384xf32>
    tpu.vector_store %arg5[%c24, %c0_12], %10 {strides = array<i32>} : memref<72x384xf32, #tpu.memory_space<vmem>>, vector<8x384xf32>,
    %c0_13 = arith.constant 0 : index
    %c0_14 = arith.constant 0 : index
    %c19 = arith.constant 19 : index
    %12 = vector.load %arg1[%c0_13, %c0_14, %c19] : memref<1x8x512xf32, #tpu.memory_space<vmem>>, vector<1x8x384xf32>
    %13 = vector.shape_cast %12 : vector<1x8x384xf32> to vector<8x384xf32>
    %c32 = arith.constant 32 : index
    %c0_15 = arith.constant 0 : index
    %14 = vector.load %arg5[%c32, %c0_15] : memref<72x384xf32, #tpu.memory_space<vmem>>, vector<8x384xf32>
    tpu.vector_store %arg5[%c32, %c0_15], %13 {strides = array<i32>} : memref<72x384xf32, #tpu.memory_space<vmem>>, vector<8x384xf32>,
    %c0_16 = arith.constant 0 : index
    %c0_17 = arith.constant 0 : index
    %c20 = arith.constant 20 : index
    %15 = vector.load %arg1[%c0_16, %c0_17, %c20] : memref<1x8x512xf32, #tpu.memory_space<vmem>>, vector<1x8x384xf32>
    %16 = vector.shape_cast %15 : vector<1x8x384xf32> to vector<8x384xf32>
    %c40 = arith.constant 40 : index
    %c0_18 = arith.constant 0 : index
    %17 = vector.load %arg5[%c40, %c0_18] : memref<72x384xf32, #tpu.memory_space<vmem>>, vector<8x384xf32>
    tpu.vector_store %arg5[%c40, %c0_18], %16 {strides = array<i32>} : memref<72x384xf32, #tpu.memory_space<vmem>>, vector<8x384xf32>,
    %c0_19 = arith.constant 0 : index
    %c0_20 = arith.constant 0 : index
    %c36 = arith.constant 36 : index
    %18 = vector.load %arg1[%c0_19, %c0_20, %c36] : memref<1x8x512xf32, #tpu.memory_space<vmem>>, vector<1x8x384xf32>
    %19 = vector.shape_cast %18 : vector<1x8x384xf32> to vector<8x384xf32>
    %c48 = arith.constant 48 : index
    %c0_21 = arith.constant 0 : index
    %20 = vector.load %arg5[%c48, %c0_21] : memref<72x384xf32, #tpu.memory_space<vmem>>, vector<8x384xf32>
    tpu.vector_store %arg5[%c48, %c0_21], %19 {strides = array<i32>} : memref<72x384xf32, #tpu.memory_space<vmem>>, vector<8x384xf32>,
    %c0_22 = arith.constant 0 : index
    %c0_23 = arith.constant 0 : index
    %c37 = arith.constant 37 : index
    %21 = vector.load %arg1[%c0_22, %c0_23, %c37] : memref<1x8x512xf32, #tpu.memory_space<vmem>>, vector<1x8x384xf32>
    %22 = vector.shape_cast %21 : vector<1x8x384xf32> to vector<8x384xf32>
    %c56 = arith.constant 56 : index
    %c0_24 = arith.constant 0 : index
    %23 = vector.load %arg5[%c56, %c0_24] : memref<72x384xf32, #tpu.memory_space<vmem>>, vector<8x384xf32>
    tpu.vector_store %arg5[%c56, %c0_24], %22 {strides = array<i32>} : memref<72x384xf32, #tpu.memory_space<vmem>>, vector<8x384xf32>,
    %c0_25 = arith.constant 0 : index
    %c0_26 = arith.constant 0 : index
    %c38 = arith.constant 38 : index
    %24 = vector.load %arg1[%c0_25, %c0_26, %c38] : memref<1x8x512xf32, #tpu.memory_space<vmem>>, vector<1x8x384xf32>
    %25 = vector.shape_cast %24 : vector<1x8x384xf32> to vector<8x384xf32>
    %c64 = arith.constant 64 : index
    %c0_27 = arith.constant 0 : index
    %26 = vector.load %arg5[%c64, %c0_27] : memref<72x384xf32, #tpu.memory_space<vmem>>, vector<8x384xf32>
    tpu.vector_store %arg5[%c64, %c0_27], %25 {strides = array<i32>} : memref<72x384xf32, #tpu.memory_space<vmem>>, vector<8x384xf32>,
    %c0_28 = arith.constant 0 : index
    %c0_29 = arith.constant 0 : index
    %27 = vector.load %arg2[%c0_28, %c0_29] : memref<8x72xf32, #tpu.memory_space<vmem>>, vector<8x72xf32>
    %c0_30 = arith.constant 0 : index
    %c0_31 = arith.constant 0 : index
    %28 = vector.load %arg5[%c0_30, %c0_31] : memref<72x384xf32, #tpu.memory_space<vmem>>, vector<72x384xf32>
    %cst = arith.constant dense<0.000000e+00> : vector<8x384xf32>
    %29 = tpu.matmul %27, %28, %cst {dimension_numbers = #tpu.dot_dimension_numbers<[1], [0], [0], [1], [0, 0, 1, 1], [], []>} : vector<8x72xf32>, vector<72x384xf32>, vector<8x384xf32> -> vector<8x384xf32>
    %c0_32 = arith.constant 0 : index
    %c0_33 = arith.constant 0 : index
    %30 = vector.load %arg3[%c0_32, %c0_33] : memref<8x1xf32, #tpu.memory_space<vmem>>, vector<8x1xf32>
    %31 = vector.broadcast %30 : vector<8x1xf32> to vector<8x384xf32>
    %32 = arith.addf %29, %31 : vector<8x384xf32>
    %cst_34 = arith.constant 0.000000e+00 : f32
    %33 = vector.broadcast %cst_34 : f32 to vector<8x384xf32>
    %34 = arith.maximumf %32, %33 : vector<8x384xf32>
    %c0_35 = arith.constant 0 : index
    %c0_36 = arith.constant 0 : index
    %c0_37 = arith.constant 0 : index
    %35 = vector.load %arg4[%c0_35, %c0_36, %c0_37] : memref<1x8x384xf32, #tpu.memory_space<vmem>>, vector<1x8x384xf32>
    %36 = vector.shape_cast %35 : vector<1x8x384xf32> to vector<8x384xf32>
    %37 = vector.shape_cast %34 : vector<8x384xf32> to vector<1x8x384xf32>
    tpu.vector_store %arg4[%c0_35, %c0_36, %c0_37], %37 {strides = array<i32>} : memref<1x8x384xf32, #tpu.memory_space<vmem>>, vector<1x8x384xf32>,
    return
  }
  func.func @transform_0(%arg0: i32) -> (i32, i32, i32) {
    %c0_i32 = arith.constant 0 : i32
    %c0_i32_0 = arith.constant 0 : i32
    %c0_i32_1 = arith.constant 0 : i32
    return %arg0, %c0_i32, %c0_i32_0 : i32, i32, i32
  }
  func.func @transform_1(%arg0: i32) -> (i32, i32) {
    %c0_i32 = arith.constant 0 : i32
    %c0_i32_0 = arith.constant 0 : i32
    %c0_i32_1 = arith.constant 0 : i32
    return %c0_i32, %c0_i32_0 : i32, i32
  }
  func.func @transform_2(%arg0: i32) -> (i32, i32) {
    %c0_i32 = arith.constant 0 : i32
    %c0_i32_0 = arith.constant 0 : i32
    %c0_i32_1 = arith.constant 0 : i32
    return %c0_i32, %c0_i32_0 : i32, i32
  }
  func.func @transform_3(%arg0: i32) -> (i32, i32, i32) {
    %c0_i32 = arith.constant 0 : i32
    %c0_i32_0 = arith.constant 0 : i32
    %c0_i32_1 = arith.constant 0 : i32
    return %arg0, %c0_i32, %c0_i32_0 : i32, i32, i32
  }
}

</mosaic_0001>

<bundles_post_ra>
// kernel: tpu_custom_call.1
= control target key start
LH: loop header
LB: loop body
LE: loop exit
PB: predicated region body
PF: predicated region fallthrough
CT: control target
= control target key end

     0   :  { %8 = vsyncpa [#allocation4], 0  ;;  %s1216_s0 = inlined_call_operand.hbm [shape: f32[2,8,512], index: 0, kind: input, shape index: {}]   ;;  %s1217_s1 = inlined_call_operand.vmem [shape: f32[8,72], index: 1, kind: input, shape index: {}]   ;;  %s1218_s2 = inlined_call_operand.vmem [shape: f32[8,1], index: 2, kind: input, shape index: {}]   ;;  %s1219_s3 = inlined_call_operand.hbm [shape: f32[2,8,384], index: 3, kind: output, shape index: {}]  }
   0x1   :  { %10 = vsyncpa [#allocation4 + $0x1], 0 }
   0x2   :  { %11 = vsyncpa [#allocation5], 0 }
   0x3   :  { %13 = vsyncpa [#allocation5 + $0x1], 0  ;;  %s1007_s12 = smov 0   ;;  %s1009_s13 = smov 0  }
   0x4   :  { %s1011_s14 = smov 0   ;;  %s1013_s15 = smov 0  }
   0x5 LB: > { %s1028_s16 = sadd.s32 4294967295, %s971_s15   ;;  %s671_s17 = sadd.s32 4294967294, %s971_s15   ;;  %s971_s15 = sphi %s1013_s15, %s1234_s15   ;;  %s967_s14 = sphi %s1011_s14, %s1233_s14   ;;  %s963_s13 = sphi %s1009_s13, %s1232_s13   ;;  %s959_s12 = sphi %s1007_s12, %s1231_s12  }
   0x6   : > { %s1032_s18 = sadd.s32 1, %s971_s15   ;;  %s26_s19 = sadd.s32 1, %s967_s14 }
   0x7   : > { %s23_s20 = ssub.s32 %s971_s15, %s1032_s18  ;;  %p33_p0 = scmp.ne.s32.totalorder %s967_s14, %s963_s13 }
   0x8   : > { %p24_p1 = scmp.eq.s32.totalorder %s23_s20, 0  ;;  %p34_p2 = scmp.eq.s32.totalorder %s971_s15, 0 }
   0x9   : > { %p39_p3 = scmp.ne.s32.totalorder %s963_s13, %s959_s12  ;;  %p40_p4 = scmp.eq.s32.totalorder %s1028_s16, 0 }
   0xa   : > { %s1044_s21 = scalar_select %p24_p1, %s967_s14, %s26_s19  }
   0xb   : > { %p1046_p5 = por %p34_p2, %p33_p0  ;;  %p1050_p6 = por %p40_p4, %p39_p3 }
   0xc   : > { %p105_p7 = scmp.eq.s32.totalorder %s1028_s16, 1  ;;  %p111_p8 = scmp.eq.s32.totalorder %s671_s17, 1 }
   0xd   : > { %p758_p10 = scmp.lt.s32.totalorder %s971_s15, 2  ;;  %s137_s26 = sand.u32 1, %s967_s14  }
   0xe   : > { %p1057_p11 = por %p105_p7, %p33_p0  ;;  %p1061_p12 = por %p111_p8, %p39_p3 }
   0xf   : > { %s684_s27 = sshll.u32 %s971_s15, 9  ;;  %s674_s28 = sshll.u32 %s137_s26, 5 }
  0x10   : > { %s1223_s24 = scalar_select %p1057_p11, 1, 0 }
  0x11   : > { %s1224_s25 = scalar_select %p1061_p12, 1, 0 }
  0x12   : > { %s1070_s4 = scalar_lea.hbm %s1216_s0, %s684_s27  ;;  %s141_s5 = scalar_lea.vmem [#allocation3], %s674_s28 }
  0x13   : > { %s149_s6 = sshll.u32 %s141_s5, 4  ;;  %p1074_p13 = pnand %p758_p10, %p1046_p5  ;;  %s1078_s6 = int_to_ptr.vmem [resolvable:$true] %s149_s6 }
  0x14   : > { %s138_s8 = scalar_lea.sflag [#allocation4], %s137_s26  ;;  %s875_s9 = scalar_lea.hbm %s1070_s4, 512 }
  0x15   : > { %p876_p2 = scmp.ne.s32.totalorder %s1070_s4, %s875_s9  ;;  %p877_p3 = pneg %p1074_p13 }
  0x16   : > { %s880_s17 = scalar_lea.hbm %s1216_s0, 1024  ;;  %p881_p5 = scmp.lt.u32.totalorder %s1070_s4, %s1216_s0 }
  0x17   : > { %p878_p4 = pnand %p877_p3, %p876_p2  ;;  %p882_p8 = scmp.lt.u32.totalorder %s880_s17, %s875_s9 }
  0x18   : > { %p884_p9 = scmp.lt.u32.totalorder %s875_s9, %s1070_s4 }
  0x19   : > { %p879_p7 = pneg %p878_p4  ;;  %p883_p10 = por %p882_p8, %p881_p5 }
  0x1b   : > { %p885_p0 = por %p884_p9, %p883_p10 }
  0x1d   : > { %p886_p1 = pnand %p885_p0, %p879_p7 }
  0x1f   : > { %889 = shalt.err (!%p886_p1)
}
  0x20   : > { %s890_s22 = scalar_lea.vmem %s1078_s6, 512  ;;  %s973_s26 = smov [#allocation3]  }
  0x21   : > { %p891_p2 = scmp.ne.s32.totalorder %s1078_s6, %s890_s22  ;;  %s895_s27 = sshll.u32 %s973_s26, 4  ;;  %s896_s27 = int_to_ptr.vmem [resolvable:$false] %s895_s27 }
  0x22   : > { %s897_s28 = scalar_lea.vmem %s896_s27, 1024  ;;  %p898_p11 = scmp.lt.s32.totalorder %s1078_s6, %s896_s27 }
  0x23   : > { %p893_p4 = pnand %p891_p2, %p877_p3  ;;  %p899_p5 = scmp.lt.s32.totalorder %s897_s28, %s890_s22 }
  0x25   : > { %p894_p12 = pneg %p893_p4  ;;  %p900_p8 = por %p899_p5, %p898_p11 }
  0x27   : > { %p901_p9 = pnand %p900_p8, %p894_p12 }
  0x29   : > { %904 = shalt.err (!%p901_p9)
}
  0x2a   : > { %753 = dma.hbm_to_vmem [thread:$0]  (!%p1074_p13), %s1070_s4, 512, %s1078_s6, %s138_s8  }
  0x2b   : > { %p1226_p0 = scmp.lt.s32.totalorder %s971_s15, 3  ;;  %p1227_p1 = scmp.ge.s32.totalorder %s971_s15, 1 }
  0x2d   : > { %p155_p3 = pnand %p1227_p1, %p1226_p0 }
  0x2e   : > { %s1112_s29 = sand.u32 (!%p155_p3), 1, %s963_s13  }
  0x2f   : > { %158 = sbr.rel (%p155_p3) target bundleno = 438 (0x1b6), region = 32  ;;  %s678_s30 = sshll.u32 (!%p155_p3), %s1112_s29, 5 }
  0x30   : > { %s161_s5 = scalar_lea.sflag (!%p155_p3), [#allocation4], %s1112_s29  ;;  %s164_s9 = scalar_lea.vmem (!%p155_p3), [#allocation3], %s678_s30 }
  0x36   : > { %950 = dma.done.wait (%p1050_p6), %s161_s5, 512  }
  0x37   : > { %952 = vsyncadd (%p1050_p6), %s161_s5, 4294966784  ;;  %v974_v0 = vmov 0.0|0.0   ;;  %v220_v1 = vld [vmem:[%s164_s9 + $0x8] sm:$0xff]  ;;  %v1121_v2 = vld [vmem:[%s164_s9 + $0x10] sm:$0xff]  ;;  %s975_s4 = smov 126   ;;  %s976_s6 = smov 127  }
  0x38   : > { %732 = vmatprep.subr.bf16.mxu1 %v974_v0  ;;  %v1123_v3 = vld [vmem:[%s164_s9] sm:$0xff]  ;;  %v814_v4 = vpack.i.bf16 %v1121_v2, %v220_v1  ;;  %v196_v5 = vld [vmem:[%s164_s9 + $0x18] sm:$0xff]  ;;  %s977_s7 = smov 110   ;;  %s978_s23 = smov 108   ;;  %v980_v7 = vmov 0.0   ;;  %vm983_vm0 = vmmov 0  }
  0x39   : > { %v809_v6 = vpack.i.bf16 %v196_v5, %v1123_v3  ;;  %s979_s8 = smov 109   ;;  %503 = vmatprep.mubr.f32.mxu0 %v980_v7  ;;  %s981_s10 = smov 91   ;;  %713 = vmatprep.mubr.msk.f32.mxu1 %vm983_vm0, %v980_v7  ;;  %v984_v8 = vmov 0   ;;  %v429_v9 = vld [vmem:[%s1218_s2] sm:$0xff]  ;;  %vm209_vm1 = vcmask 1039360   ;;  %vm235_vm2 = vcmask 1031168  }
  0x3a   : > { %815 = vrot.lane.b32.xlu1 %v814_v4, %s975_s4  ;;  %805 = vrot.lane.b32.xlu0 %v814_v4, %s976_s6  ;;  %s982_s11 = smov 92   ;;  %s985_s17 = smov 90   ;;  %vm261_vm3 = vcmask 900096   ;;  %vm287_vm4 = vcmask 891904   ;;  %vm313_vm5 = vcmask 883712   ;;  %vm339_vm6 = vcmask 752640  }
  0x3b   : > { %874 = vset.pattern.permute.xlu0 %v984_v8  ;;  %vm365_vm7 = vcmask 744448   ;;  %vm391_vm8 = vcmask 736256   ;;  %vm435_vm9 = vcmask 588800   ;;  %s744_s27 = smul.u32 24, %s1112_s29  ;;  %p1228_p11 = scmp.ne.s32.totalorder %s1223_s24, 0 }
  0x3c   : > { %s745_s28 = smul.u32 384, %s1028_s16  ;;  %s587_s16 = scalar_lea.sflag [#allocation5], %s1112_s29 }
  0x3d   : > { %s186_s30 = scalar_lea.vmem [#allocation6], %s744_s27 }
  0x3e   : > { %820 = vrot.lane.b32.xlu1 %v814_v4, %s977_s7  ;;  %810 = vrot.lane.b32.xlu0 %v809_v6, %s976_s6  ;;  %s601_s5 = sshll.u32 %s186_s30, 4  ;;  %s1172_s6 = scalar_lea.hbm %s1219_s3, %s745_s28  ;;  %s1174_s5 = int_to_ptr.vmem [resolvable:$true] %s601_s5 }
  0x42   : > { %830 = vrot.lane.b32.xlu1 %v809_v6, %s977_s7  ;;  %825 = vrot.lane.b32.xlu0 %v809_v6, %s975_s4  ;;  %s905_s7 = scalar_lea.vmem %s1174_s5, 384 }
  0x43   : > { %p906_p6 = scmp.ne.s32.totalorder %s1174_s5, %s905_s7 }
  0x45   : > { %p907_p12 = pnand %p906_p6, %p1228_p11 }
  0x46   : > { %840 = vrot.lane.b32.xlu1 %v814_v4, %s978_s23  ;;  %835 = vrot.lane.b32.xlu0 %v814_v4, %s979_s8 }
  0x47   : > { %p908_p13 = pneg %p907_p12 }
  0x4a   : > { %850 = vrot.lane.b32.xlu1 %v809_v6, %s978_s23  ;;  %845 = vrot.lane.b32.xlu0 %v809_v6, %s979_s8  ;;  %s986_s23 = smov [#allocation6]  }
  0x4b   : > { %s909_s8 = sshll.u32 %s986_s23, 4  ;;  %s910_s8 = int_to_ptr.vmem [resolvable:$false] %s909_s8 }
  0x4c   : > { %p912_p7 = scmp.lt.s32.totalorder %s1174_s5, %s910_s8 }
  0x4e   : > { %860 = vrot.lane.b32.xlu1 %v814_v4, %s981_s10  ;;  %855 = vrot.lane.b32.xlu0 %v814_v4, %s982_s11 }
  0x52   : > { %870 = vrot.lane.b32.xlu1 %v809_v6, %s981_s10  ;;  %865 = vrot.lane.b32.xlu0 %v809_v6, %s982_s11  ;;  %s911_s10 = scalar_lea.vmem %s910_s8, 768 }
  0x53   : > { %p913_p10 = scmp.lt.s32.totalorder %s911_s10, %s905_s7 }
  0x55   : > { %p914_p2 = por %p913_p10, %p912_p7 }
  0x56   : > { %387 = vrot.lane.b32.xlu1 %v1121_v2, %s985_s17  ;;  %385 = vrot.lane.b32.xlu0 %v220_v1, %s985_s17 }
  0x57   : > { %p915_p4 = pnand %p914_p2, %p908_p13 }
  0x5a   : > { %389 = vrot.lane.b32.xlu1 %v196_v5, %s985_s17  ;;  %383 = vrot.lane.b32.xlu0 %v1123_v3, %s985_s17 }
  0x5e   : > { %432 = vperm.xlu0 %874, %v429_v9  }
  0xac   : > { %v816_v10 = vpop.permute.xlu1 %815  ;;  %v806_v11 = vpop.permute.xlu0 %805 }
  0xad   : > { %v808_v12 = vunpack.i.h.bf16 %v806_v11  ;;  %v807_v13 = vunpack.i.l.bf16 %v806_v11  ;;  %v818_v14 = vunpack.i.h.bf16 %v816_v10  ;;  %v817_v15 = vunpack.i.l.bf16 %v816_v10 }
  0xaf   : > { %v211_v16 = vsel %vm209_vm1, %v807_v13, %v808_v12  ;;  %v237_v26 = vsel %vm235_vm2, %v817_v15, %v818_v14 }
  0xb0   : > { %v821_v17 = vpop.permute.xlu1 %820  ;;  %v811_v18 = vpop.permute.xlu0 %810  ;;  %v716_v19 = vpack.c.bf16 %v211_v16, %v220_v1 }
  0xb1   : > { %v823_v20 = vunpack.i.h.bf16 %v821_v17  ;;  %v822_v21 = vunpack.i.l.bf16 %v821_v17  ;;  %v813_v22 = vunpack.i.h.bf16 %v811_v18  ;;  %v812_v23 = vunpack.i.l.bf16 %v811_v18 }
  0xb2   : > { %717 = vmatprep.subr.bf16.mxu0 %v716_v19 }
  0xb3   : > { %v210_v24 = vsel %vm209_vm1, %v812_v23, %v807_v13  ;;  %v212_v25 = vsel %vm209_vm1, %v808_v12, %v813_v22  ;;  %v263_v27 = vsel %vm261_vm3, %v822_v21, %v823_v20 }
  0xb4   : > { %v831_v28 = vpop.permute.xlu1 %830  ;;  %v826_v29 = vpop.permute.xlu0 %825  ;;  %v718_v30 = vpack.c.bf16 %v210_v24, %v1123_v3  ;;  %v733_v31 = vpack.c.bf16 %v212_v25, %v1121_v2  ;;  %v720_v32 = vpack.c.bf16 %v263_v27, %v237_v26  ;;  %v401_v27 = vld [vmem:[%s1217_s1] sm:$0xff] }
  0xb5   : > { %v833_v33 = vunpack.i.h.bf16 %v831_v28  ;;  %v832_v34 = vunpack.i.l.bf16 %v831_v28  ;;  %v828_v35 = vunpack.i.h.bf16 %v826_v29  ;;  %v827_v36 = vunpack.i.l.bf16 %v826_v29 }
  0xb6   : > { %719 = vmatpush1.bf16.msra.mxu0 %v718_v30  ;;  %734 = vmatpush3.bf16.msra.mxu1 %v733_v31 }
  0xb7   : > { %721 = vmatprep.subr.bf16.mxu0 %v720_v32  ;;  %735 = vmatprep.subr.bf16.mxu1 %v974_v0  ;;  %v236_v37 = vsel %vm235_vm2, %v827_v36, %v817_v15  ;;  %v262_v38 = vsel %vm261_vm3, %v832_v34, %v822_v21  ;;  %v238_v39 = vsel %vm235_vm2, %v818_v14, %v828_v35 }
  0xb8   : > { %v841_v40 = vpop.permute.xlu1 %840  ;;  %v836_v41 = vpop.permute.xlu0 %835  ;;  %v722_v42 = vpack.c.bf16 %v262_v38, %v236_v37  ;;  %v264_v43 = vsel %vm261_vm3, %v823_v20, %v833_v33 }
  0xb9   : > { %v843_v44 = vunpack.i.h.bf16 %v841_v40  ;;  %v842_v45 = vunpack.i.l.bf16 %v841_v40  ;;  %v838_v46 = vunpack.i.h.bf16 %v836_v41  ;;  %v837_v47 = vunpack.i.l.bf16 %v836_v41 }
  0xba   : > { %723 = vmatpush1.bf16.msra.mxu0 %v722_v42  ;;  %v736_v48 = vpack.c.bf16 %v264_v43, %v238_v39 }
  0xbb   : > { %v289_v49 = vsel %vm287_vm4, %v837_v47, %v838_v46  ;;  %v315_v50 = vsel %vm313_vm5, %v842_v45, %v843_v44 }
  0xbc   : > { %737 = vmatpush3.bf16.msra.mxu1 %v736_v48  ;;  %v851_v51 = vpop.permute.xlu1 %850  ;;  %v846_v52 = vpop.permute.xlu0 %845  ;;  %v724_v53 = vpack.c.bf16 %v315_v50, %v289_v49 }
  0xbd   : > { %v853_v54 = vunpack.i.h.bf16 %v851_v51  ;;  %v852_v55 = vunpack.i.l.bf16 %v851_v51  ;;  %v848_v56 = vunpack.i.h.bf16 %v846_v52  ;;  %v847_v57 = vunpack.i.l.bf16 %v846_v52  ;;  %738 = vmatprep.subr.bf16.mxu1 %v974_v0 }
  0xbe   : > { %725 = vmatprep.subr.bf16.mxu0 %v724_v53 }
  0xbf   : > { %v288_v58 = vsel %vm287_vm4, %v847_v57, %v837_v47  ;;  %v314_v59 = vsel %vm313_vm5, %v852_v55, %v842_v45  ;;  %v290_v60 = vsel %vm287_vm4, %v838_v46, %v848_v56  ;;  %v316_v61 = vsel %vm313_vm5, %v843_v44, %v853_v54 }
  0xc0   : > { %v861_v62 = vpop.permute.xlu1 %860  ;;  %v856_v63 = vpop.permute.xlu0 %855  ;;  %v726_v1 = vpack.c.bf16 %v314_v59, %v288_v58  ;;  %v739_v2 = vpack.c.bf16 %v316_v61, %v290_v60 }
  0xc1   : > { %v863_v3 = vunpack.i.h.bf16 %v861_v62  ;;  %v862_v4 = vunpack.i.l.bf16 %v861_v62  ;;  %v858_v5 = vunpack.i.h.bf16 %v856_v63  ;;  %v857_v6 = vunpack.i.l.bf16 %v856_v63 }
  0xc2   : > { %727 = vmatpush1.bf16.msra.mxu0 %v726_v1  ;;  %740 = vmatpush3.bf16.msra.mxu1 %v739_v2 }
  0xc3   : > { %v341_v8 = vsel %vm339_vm6, %v857_v6, %v858_v5  ;;  %v367_v9 = vsel %vm365_vm7, %v862_v4, %v863_v3  ;;  %741 = vmatprep.subr.bf16.mxu1 %v974_v0 }
  0xc4   : > { %v871_v10 = vpop.permute.xlu1 %870  ;;  %v866_v11 = vpop.permute.xlu0 %865  ;;  %v728_v12 = vpack.c.bf16 %v367_v9, %v341_v8 }
  0xc5   : > { %v873_v13 = vunpack.i.h.bf16 %v871_v10  ;;  %v872_v14 = vunpack.i.l.bf16 %v871_v10  ;;  %v868_v15 = vunpack.i.h.bf16 %v866_v11  ;;  %v867_v16 = vunpack.i.l.bf16 %v866_v11 }
  0xc6   : > { %729 = vmatprep.subr.bf16.mxu0 %v728_v12 }
  0xc7   : > { %v340_v17 = vsel %vm339_vm6, %v867_v16, %v857_v6  ;;  %v366_v18 = vsel %vm365_vm7, %v872_v14, %v862_v4  ;;  %v342_v19 = vsel %vm339_vm6, %v858_v5, %v868_v15  ;;  %v368_v20 = vsel %vm365_vm7, %v863_v3, %v873_v13 }
  0xc8   : > { %v388_v21 = vpop.permute.xlu1 %387  ;;  %v386_v22 = vpop.permute.xlu0 %385  ;;  %v730_v0 = vpack.c.bf16 %v366_v18, %v340_v17  ;;  %v742_v23 = vpack.c.bf16 %v368_v20, %v342_v19 }
  0xc9   : > { %v393_v24 = vsel %vm391_vm8, %v386_v22, %v388_v21 }
  0xca   : > { %731 = vmatpush1.bf16.msra.mxu0 %v730_v0  ;;  %743 = vmatpush3.bf16.msra.mxu1 %v742_v23 }
  0xcb   : > { %455 = vmatprep.subr.mxu0 %v393_v24  ;;  %711 = vmatprep.subr.mxu1 %v980_v7 }
  0xcc   : > { %v390_v25 = vpop.permute.xlu1 %389  ;;  %v384_v26 = vpop.permute.xlu0 %383 }
  0xcd   : > { %v392_v28 = vsel %vm391_vm8, %v384_v26, %v386_v22  ;;  %v394_v29 = vsel %vm391_vm8, %v388_v21, %v390_v25 }
  0xce   : > { %456 = vmatpush1.msra.mxu0 %v392_v28  ;;  %712 = vmatpush3.msra.mxu1 %v394_v29 }
  0xcf   : > { %679 = vmatmul.mubr.msk.f32.vlgmr.msra.gmra.mrb[0].mxu0 %vm435_vm9, %v401_v27  ;;  %714 = vmatmul.mubr.msk.f32.vlgmr.msra.gmra.mrb[0].mxu1 %vm435_vm9, %v401_v27 }
  0xdd   : > { %v433_v30 = vpop.permute.xlu0 %432 }
 0x1a2   : > { %v505_v31 = vpop.f32.mrb[0].mxu0  ;;  %v576_v32 = vpop.f32.mrb[0].mxu1 }
 0x1a3   : > { %v506_v7 = vadd.f32 %v505_v31, %v433_v30  ;;  %v577_v33 = vadd.f32 %v576_v32, %v433_v30  ;;  %v507_v34 = vpop.f32.mrb[1].mxu0  ;;  %v715_v35 = vpop.f32.mrb[1].mxu1 }
 0x1a4   : > { %v508_v36 = vadd.f32 %v507_v34, %v433_v30 }
 0x1a5   : > { %v580_v37 = vmax.f32 %v506_v7, 0.0  ;;  %v582_v38 = vmax.f32 %v577_v33, 0.0 }
 0x1a6   : > { %v581_v39 = vmax.f32 %v508_v36, 0.0 }
 0x1a7   : > { %583 = vst [vmem:[%s186_s30] sm:$0xff] %v580_v37  ;;  %585 = vst [vmem:[%s186_s30 + $0x10] sm:$0xff] %v582_v38 }
 0x1a8   : > { %584 = vst [vmem:[%s186_s30 + $0x8] sm:$0xff] %v581_v39 }
 0x1a9   : > { %918 = shalt.err (!%p915_p4)
}
 0x1aa   : > { %s919_s29 = scalar_lea.hbm %s1172_s6, 384  ;;  %s923_s19 = scalar_lea.hbm %s1219_s3, 768 }
 0x1ab   : > { %p920_p5 = scmp.ne.s32.totalorder %s1172_s6, %s919_s29  ;;  %p924_p0 = scmp.lt.u32.totalorder %s1172_s6, %s1219_s3 }
 0x1ac   : > { %p925_p1 = scmp.lt.u32.totalorder %s923_s19, %s919_s29  ;;  %p927_p6 = scmp.lt.u32.totalorder %s919_s29, %s1172_s6 }
 0x1ad   : > { %p921_p8 = pnand %p920_p5, %p1228_p11 }
 0x1ae   : > { %p926_p3 = por %p925_p1, %p924_p0 }
 0x1af   : > { %p922_p9 = pneg %p921_p8 }
 0x1b0   : > { %p928_p12 = por %p927_p6, %p926_p3 }
 0x1b2   : > { %p929_p13 = pnand %p928_p12, %p922_p9 }
 0x1b4   : > { %932 = shalt.err (!%p929_p13)
}
 0x1b5   : > { %748 = dma.vmem_to_hbm [thread:$0]  (%p1228_p11), %s1174_s5, 384, %s1172_s6, %s587_s16  }
 0x1b6 PF: > { %s613_s26 = sand.u32 1, %s959_s12   ;;  %p1229_p7 = scmp.ne.s32.totalorder %s1224_s25, 0 }
 0x1b7   : > { %p1230_p10 = scmp.ge.s32.totalorder %s971_s15, 2  ;;  %s614_s27 = scalar_lea.sflag [#allocation5], %s613_s26 }
 0x1b9   : > { %p755_p2 = pnand %p1230_p10, %p1229_p7 }
 0x1bb   : > { %954 = dma.done.wait (!%p755_p2), %s614_s27, 384  }
 0x1bc   : > { %956 = vsyncadd (!%p755_p2), %s614_s27, 4294966912  ;;  %p16_p4 = scmp.ge.s32.totalorder %s1032_s18, 4   ;;  %s1231_s12 = smov %s963_s13 }
 0x1bd   : > { %s1232_s13 = smov %s967_s14  ;;  %s1233_s14 = smov %s1044_s21 }
 0x1be   : > { %s1234_s15 = smov %s1032_s18  ;;  %18 = sbr.rel (!%p16_p4) target bundleno = 5 (0x5), region = 77 }
 0x1c5   :  { %619 = vsyncpa [#allocation4], 1 }
 0x1c6   :  { %621 = vsyncpa [#allocation4 + $0x1], 1 }
 0x1c7   :  { %622 = vsyncpa [#allocation5], 1 }
 0x1c8   :  { %624 = vsyncpa [#allocation5 + $0x1], 1 }

</bundles_post_ra>
